<compile_context>
chip_gen: v7x
topology: tpu7x:2x2x1
jax: 0.10.0
libtpu: 0.0.40
codegen_flags: <defaults>
</compile_context>

<pallas_src>
import functools

import jax
import jax.numpy as jnp
import numpy as np
from jax.experimental import pallas as pl
from jax.experimental.pallas import tpu as pltpu


def _round_up(x, m):
    return ((x + m - 1) // m) * m


# --------------------------------------------------------------------------
# Fused Pallas kernel: one grid step == one SAGEConv layer over ALL nodes.
# Feature-major (transposed) layout:
#   h_{l+1}^T = act( [W_neigh^T | W_self^T] @ [ (A @ h_l)^T ; h_l^T ] + b^T )
# The hidden state is carried across layers in the VMEM-resident output block.
# --------------------------------------------------------------------------
def _fused_sage_kernel(xT_ref, aT_ref, wT_ref, bT_ref, oT_ref, stackT_ref, *,
                       num_layers, f_pad):
    l = pl.program_id(0)

    # Layer 0: seed the carried (VMEM-resident) hidden state from the padded,
    # transposed node features.
    @pl.when(l == 0)
    def _():
        oT_ref[...] = xT_ref[...]

    # Carried hidden state, cast to bf16 so both MXU operands are bf16.
    hT = oT_ref[...].astype(jnp.bfloat16)                       # (F, N)

    # Mean neighbor aggregation, transposed: (F,N) @ (N,N) -> (F,N).
    # bf16 operands, f32 MXU accumulation, full 256-lane output.
    h_neighT = jnp.dot(hT, aT_ref[...], preferred_element_type=jnp.float32)

    # Pack [h_neigh^T ; h_self^T] along the sublane axis so the neighbor +
    # self linear transforms become ONE K=2F contraction against the
    # pre-stacked [W_neigh^T | W_self^T].
    stackT_ref[:f_pad, :] = h_neighT.astype(jnp.bfloat16)
    stackT_ref[f_pad:, :] = hT
    outT = jnp.dot(wT_ref[...], stackT_ref[...],
                   preferred_element_type=jnp.float32) + bT_ref[...]

    # Hidden layers: ReLU and carry to the next grid step.
    @pl.when(l < num_layers - 1)
    def _():
        oT_ref[...] = jnp.maximum(outT, 0.0).astype(oT_ref.dtype)

    # Final layer: emit the result (written back to HBM once at grid end).
    @pl.when(l == num_layers - 1)
    def _():
        oT_ref[...] = outT.astype(oT_ref.dtype)


def sage_forward(a_norm, x, params):
    """Fused multi-layer SAGE forward pass via a single pallas_call."""
    n, in_size = x.shape
    num_layers = len(params)
    out_size = params[-1]["w_neigh"].shape[1]

    # Uniform lane/sublane-dense feature width for all layers (zero-padded).
    feat_dims = [in_size] + [p["w_neigh"].shape[1] for p in params]
    f_pad = _round_up(max(feat_dims), 128)

    def pad_w(w):
        fi, fo = w.shape
        return jnp.pad(w, ((0, f_pad - fi), (0, f_pad - fo)))

    # (L, F, 2F) bf16: [W_neigh^T | W_self^T]; columns [0:F) hit h_neigh^T,
    # columns [F:2F) hit h_self^T.
    wT_all = jnp.stack([
        jnp.concatenate([pad_w(p["w_neigh"]).T, pad_w(p["w_self"]).T], axis=1)
        for p in params]).astype(jnp.bfloat16)
    # (L, F, 1) f32 bias, broadcast over the N lane dimension in-kernel.
    bT_all = jnp.stack([
        jnp.pad(p["bias"], ((0, 0), (0, f_pad - p["bias"].shape[-1]))).T
        for p in params]).astype(jnp.float32)
    # (F, N) f32 transposed, zero-padded features (read once, at layer 0).
    xT_pad = jnp.pad(x, ((0, 0), (0, f_pad - in_size))).T.astype(jnp.float32)
    # (N, N) bf16 transposed row-normalized adjacency (resident across layers).
    aT = a_norm.T.astype(jnp.bfloat16)

    kernel = functools.partial(_fused_sage_kernel,
                               num_layers=num_layers, f_pad=f_pad)

    flops = num_layers * 2 * (f_pad * n * n + f_pad * (2 * f_pad) * n)
    bytes_accessed = (aT.size * 2 + xT_pad.size * 4 + wT_all.size * 2
                      + bT_all.size * 4 + f_pad * n * 4)

    outT = pl.pallas_call(
        kernel,
        out_shape=jax.ShapeDtypeStruct((f_pad, n), jnp.float32),
        grid_spec=pltpu.PrefetchScalarGridSpec(
            num_scalar_prefetch=0,
            grid=(num_layers,),
            in_specs=[
                # transposed padded node features: constant block -> DMA'd once
                pl.BlockSpec((f_pad, n), lambda l: (0, 0)),
                # transposed row-normalized adjacency: resident across layers
                pl.BlockSpec((n, n), lambda l: (0, 0)),
                # per-layer stacked weight^T: kernel sees (F, 2F)
                pl.BlockSpec((None, f_pad, 2 * f_pad), lambda l: (l, 0, 0)),
                # per-layer bias^T: kernel sees (F, 1)
                pl.BlockSpec((None, f_pad, 1), lambda l: (l, 0, 0)),
            ],
            # Constant block index -> VMEM-resident across the layer axis; the
            # hidden state is carried here (no separate H scratch).
            out_specs=pl.BlockSpec((f_pad, n), lambda l: (0, 0)),
            scratch_shapes=[
                pltpu.VMEM((2 * f_pad, n), jnp.bfloat16),  # [h_neigh^T; h^T]
            ],
        ),
        compiler_params=pltpu.CompilerParams(
            # the layer axis is a sequential carry through the resident output
            dimension_semantics=("arbitrary",),
            vmem_limit_bytes=64 * 1024 * 1024),
        cost_estimate=pl.CostEstimate(flops=flops, transcendentals=0,
                                      bytes_accessed=bytes_accessed),
    )(xT_pad, aT, wT_all, bT_all)

    # Back to node-major and strip the lane padding of the final layer.
    return outT.T[:, :out_size]


# --------------------------------------------------------------------------
# Params + pure-JAX reference
# --------------------------------------------------------------------------
def init_sage_params(key, in_size, hid_size, out_size, dtype=jnp.float32):
    dims = [(in_size, hid_size), (hid_size, hid_size), (hid_size, out_size)]
    params = []
    for li, (fi, fo) in enumerate(dims):
        k1, k2, key = jax.random.split(key, 3)
        scale = 1.0 / np.sqrt(fi)
        params.append(dict(
            w_neigh=(jax.random.normal(k1, (fi, fo), dtype) * scale),
            w_self=(jax.random.normal(k2, (fi, fo), dtype) * scale),
            bias=jnp.zeros((1, fo), dtype) + 0.01 * (li + 1),
        ))
    return params


def sage_forward_ref(a_norm, x, params):
    """Pure-JAX f32 reference for correctness checking."""
    h = x
    n_layers = len(params)
    for l, p in enumerate(params):
        h_neigh = a_norm @ h
        h = h @ p["w_self"] + h_neigh @ p["w_neigh"] + p["bias"]
        if l != n_layers - 1:
            h = jnp.maximum(h, 0.0)
    return h


# --------------------------------------------------------------------------
if __name__ == "__main__":
    key = jax.random.PRNGKey(0)

    N = 256          # number of nodes
    IN_SIZE = 64
    HID_SIZE = 64
    OUT_SIZE = 32

    k_feat, k_adj, k_params = jax.random.split(key, 3)

    # node features
    x = jax.random.normal(k_feat, (N, IN_SIZE), jnp.float32)

    # random sparse-ish graph; guarantee >= 1 in-neighbor per node (self loop)
    adj = (jax.random.uniform(k_adj, (N, N)) < 0.05).astype(jnp.float32)
    adj = jnp.maximum(adj, jnp.eye(N, dtype=jnp.float32))
    in_deg = jnp.sum(adj, axis=1, keepdims=True)
    a_norm = adj / in_deg                     # row-normalized: mean aggregation

    params = init_sage_params(k_params, IN_SIZE, HID_SIZE, OUT_SIZE)

    out = sage_forward(a_norm, x, params)
    out = jax.block_until_ready(out)

    ref = sage_forward_ref(a_norm, x, params)
    # bf16 MXU operands with f32 accumulation -> relaxed tolerance vs f32 ref.
    np.testing.assert_allclose(np.asarray(out), np.asarray(ref),
                               rtol=5e-2, atol=5e-2)

    print("KERNEL_OK")
</pallas_src>

<mosaic_0001>
module attributes {stable_mosaic.version = 11 : i64} {
  func.func @_fused_sage_kernel(%arg0: i32, %arg1: memref<128x256xf32, #tpu.memory_space<vmem>>, %arg2: memref<256x256xbf16, #tpu.memory_space<vmem>>, %arg3: memref<1x128x256xbf16, #tpu.memory_space<vmem>>, %arg4: memref<1x128x1xf32, #tpu.memory_space<vmem>>, %arg5: memref<128x256xf32, #tpu.memory_space<vmem>>, %arg6: memref<256x256xbf16, #tpu.memory_space<vmem>>) attributes {dimension_semantics = [#tpu.dimension_semantics<arbitrary>], iteration_bounds = array<i64: 3>, scalar_prefetch = 0 : i64, scratch_operands = 1 : i64, tpu.core_type = #tpu.core_type<tc>, window_params = [{pipeline_mode = #tpu.pipeline_mode<synchronous>, transform_indices = @transform_0, window_bounds = array<i64: 128, 256>}, {pipeline_mode = #tpu.pipeline_mode<synchronous>, transform_indices = @transform_1, window_bounds = array<i64: 256, 256>}, {transform_indices = @transform_2, window_bounds = array<i64: 1, 128, 256>}, {transform_indices = @transform_3, window_bounds = array<i64: 1, 128, 1>}, {pipeline_mode = #tpu.pipeline_mode<synchronous>, transform_indices = @transform_4, window_bounds = array<i64: 128, 256>}]} {
    %c0_i32 = arith.constant 0 : i32
    %0 = arith.cmpi eq, %arg0, %c0_i32 : i32
    %1 = arith.extui %0 : i1 to i32
    %c0_i32_0 = arith.constant 0 : i32
    %2 = arith.cmpi ne, %1, %c0_i32_0 : i32
    scf.if %2 {
      %c0_19 = arith.constant 0 : index
      %c0_20 = arith.constant 0 : index
      %24 = vector.load %arg1[%c0_19, %c0_20] : memref<128x256xf32, #tpu.memory_space<vmem>>, vector<128x256xf32>
      %c0_21 = arith.constant 0 : index
      %c0_22 = arith.constant 0 : index
      %25 = vector.load %arg5[%c0_21, %c0_22] : memref<128x256xf32, #tpu.memory_space<vmem>>, vector<128x256xf32>
      tpu.vector_store %arg5[%c0_21, %c0_22], %24 {strides = array<i32>} : memref<128x256xf32, #tpu.memory_space<vmem>>, vector<128x256xf32>,
    } else {
    }
    %c0 = arith.constant 0 : index
    %c0_1 = arith.constant 0 : index
    %3 = vector.load %arg5[%c0, %c0_1] : memref<128x256xf32, #tpu.memory_space<vmem>>, vector<128x256xf32>
    %4 = arith.truncf %3 : vector<128x256xf32> to vector<128x256xbf16>
    %c0_2 = arith.constant 0 : index
    %c0_3 = arith.constant 0 : index
    %5 = vector.load %arg2[%c0_2, %c0_3] : memref<256x256xbf16, #tpu.memory_space<vmem>>, vector<256x256xbf16>
    %cst = arith.constant dense<0.000000e+00> : vector<128x256xf32>
    %6 = tpu.matmul %4, %5, %cst {dimension_numbers = #tpu.dot_dimension_numbers<[1], [0], [0], [1], [0, 0, 1, 1], [], []>} : vector<128x256xbf16>, vector<256x256xbf16>, vector<128x256xf32> -> vector<128x256xf32>
    %7 = arith.truncf %6 : vector<128x256xf32> to vector<128x256xbf16>
    %c0_4 = arith.constant 0 : index
    %c0_5 = arith.constant 0 : index
    %8 = vector.load %arg6[%c0_4, %c0_5] : memref<256x256xbf16, #tpu.memory_space<vmem>>, vector<128x256xbf16>
    tpu.vector_store %arg6[%c0_4, %c0_5], %7 {strides = array<i32>} : memref<256x256xbf16, #tpu.memory_space<vmem>>, vector<128x256xbf16>,
    %c128 = arith.constant 128 : index
    %c0_6 = arith.constant 0 : index
    %9 = vector.load %arg6[%c128, %c0_6] : memref<256x256xbf16, #tpu.memory_space<vmem>>, vector<128x256xbf16>
    tpu.vector_store %arg6[%c128, %c0_6], %4 {strides = array<i32>} : memref<256x256xbf16, #tpu.memory_space<vmem>>, vector<128x256xbf16>,
    %c0_7 = arith.constant 0 : index
    %c0_8 = arith.constant 0 : index
    %c0_9 = arith.constant 0 : index
    %10 = vector.load %arg3[%c0_7, %c0_8, %c0_9] : memref<1x128x256xbf16, #tpu.memory_space<vmem>>, vector<1x128x256xbf16>
    %11 = vector.shape_cast %10 : vector<1x128x256xbf16> to vector<128x256xbf16>
    %c0_10 = arith.constant 0 : index
    %c0_11 = arith.constant 0 : index
    %12 = vector.load %arg6[%c0_10, %c0_11] : memref<256x256xbf16, #tpu.memory_space<vmem>>, vector<256x256xbf16>
    %cst_12 = arith.constant dense<0.000000e+00> : vector<128x256xf32>
    %13 = tpu.matmul %11, %12, %cst_12 {dimension_numbers = #tpu.dot_dimension_numbers<[1], [0], [0], [1], [0, 0, 1, 1], [], []>} : vector<128x256xbf16>, vector<256x256xbf16>, vector<128x256xf32> -> vector<128x256xf32>
    %c0_13 = arith.constant 0 : index
    %c0_14 = arith.constant 0 : index
    %c0_15 = arith.constant 0 : index
    %14 = vector.load %arg4[%c0_13, %c0_14, %c0_15] : memref<1x128x1xf32, #tpu.memory_space<vmem>>, vector<1x128x1xf32>
    %15 = vector.shape_cast %14 : vector<1x128x1xf32> to vector<128x1xf32>
    %16 = vector.broadcast %15 : vector<128x1xf32> to vector<128x256xf32>
    %17 = arith.addf %13, %16 : vector<128x256xf32>
    %c2_i32 = arith.constant 2 : i32
    %18 = arith.cmpi slt, %arg0, %c2_i32 : i32
    %19 = arith.extui %18 : i1 to i32
    %c0_i32_16 = arith.constant 0 : i32
    %20 = arith.cmpi ne, %19, %c0_i32_16 : i32
    scf.if %20 {
      %cst_19 = arith.constant 0.000000e+00 : f32
      %24 = vector.broadcast %cst_19 : f32 to vector<128x256xf32>
      %25 = arith.maximumf %17, %24 : vector<128x256xf32>
      %c0_20 = arith.constant 0 : index
      %c0_21 = arith.constant 0 : index
      %26 = vector.load %arg5[%c0_20, %c0_21] : memref<128x256xf32, #tpu.memory_space<vmem>>, vector<128x256xf32>
      tpu.vector_store %arg5[%c0_20, %c0_21], %25 {strides = array<i32>} : memref<128x256xf32, #tpu.memory_space<vmem>>, vector<128x256xf32>,
    } else {
    }
    %c2_i32_17 = arith.constant 2 : i32
    %21 = arith.cmpi eq, %arg0, %c2_i32_17 : i32
    %22 = arith.extui %21 : i1 to i32
    %c0_i32_18 = arith.constant 0 : i32
    %23 = arith.cmpi ne, %22, %c0_i32_18 : i32
    scf.if %23 {
      %c0_19 = arith.constant 0 : index
      %c0_20 = arith.constant 0 : index
      %24 = vector.load %arg5[%c0_19, %c0_20] : memref<128x256xf32, #tpu.memory_space<vmem>>, vector<128x256xf32>
      tpu.vector_store %arg5[%c0_19, %c0_20], %17 {strides = array<i32>} : memref<128x256xf32, #tpu.memory_space<vmem>>, vector<128x256xf32>,
    } else {
    }
    return
  }
  func.func @transform_0(%arg0: i32) -> (i32, i32) {
    %c0_i32 = arith.constant 0 : i32
    %c0_i32_0 = arith.constant 0 : i32
    %c0_i32_1 = arith.constant 0 : i32
    return %c0_i32, %c0_i32_0 : i32, i32
  }
  func.func @transform_1(%arg0: i32) -> (i32, i32) {
    %c0_i32 = arith.constant 0 : i32
    %c0_i32_0 = arith.constant 0 : i32
    %c0_i32_1 = arith.constant 0 : i32
    return %c0_i32, %c0_i32_0 : i32, i32
  }
  func.func @transform_2(%arg0: i32) -> (i32, i32, i32) {
    %c0_i32 = arith.constant 0 : i32
    %c0_i32_0 = arith.constant 0 : i32
    %c0_i32_1 = arith.constant 0 : i32
    return %arg0, %c0_i32, %c0_i32_0 : i32, i32, i32
  }
  func.func @transform_3(%arg0: i32) -> (i32, i32, i32) {
    %c0_i32 = arith.constant 0 : i32
    %c0_i32_0 = arith.constant 0 : i32
    %c0_i32_1 = arith.constant 0 : i32
    return %arg0, %c0_i32, %c0_i32_0 : i32, i32, i32
  }
  func.func @transform_4(%arg0: i32) -> (i32, i32) {
    %c0_i32 = arith.constant 0 : i32
    %c0_i32_0 = arith.constant 0 : i32
    %c0_i32_1 = arith.constant 0 : i32
    return %c0_i32, %c0_i32_0 : i32, i32
  }
}

</mosaic_0001>

<bundles_post_ra>
// kernel: tpu_custom_call.1
= control target key start
LH: loop header
LB: loop body
LE: loop exit
PB: predicated region body
PF: predicated region fallthrough
CT: control target
= control target key end

     0   :  { %9 = vsyncpa [#allocation4], 0  ;;  %s2211_s0 = inlined_call_operand.hbm [shape: f32[128,256], index: 0, kind: input, shape index: {}]   ;;  %s2212_s1 = inlined_call_operand.hbm [shape: bf16[256,256], index: 1, kind: input, shape index: {}]   ;;  %s2213_s2 = inlined_call_operand.hbm [shape: bf16[3,128,256], index: 2, kind: input, shape index: {}]   ;;  %s2214_s3 = inlined_call_operand.hbm [shape: f32[3,128,1], index: 3, kind: input, shape index: {}]   ;;  %s2215_s4 = inlined_call_operand.hbm [shape: f32[128,256], index: 4, kind: output, shape index: {}]  }
   0x1   :  { %10 = vsyncpa [#allocation7], 0 }
   0x2   :  { %11 = vsyncpa [#allocation5], 0  ;;  %s1729_s15 = smov 0   ;;  %s1731_s16 = smov 0  }
   0x3   :  { %s1733_s17 = smov 0   ;;  %s1735_s18 = smov 0  }
   0x4 LB: > { %s1748_s19 = sadd.s32 4294967295, %s1690_s18   ;;  %s1751_s20 = sadd.s32 1, %s1690_s18   ;;  %s1690_s18 = sphi %s1735_s18, %s2244_s18   ;;  %s1686_s17 = sphi %s1733_s17, %s2243_s17   ;;  %s1682_s16 = sphi %s1731_s16, %s2242_s16   ;;  %s1678_s15 = sphi %s1729_s15, %s2241_s15  }
   0x5   : > { %s63_s21 = ssub.s32 %s1690_s18, %s1751_s20  ;;  %s66_s22 = sadd.s32 1, %s1686_s17 }
   0x6   : > { %p64_p0 = scmp.eq.s32.totalorder %s63_s21, 0  ;;  %p73_p1 = scmp.ne.s32.totalorder %s1686_s17, %s1682_s16 }
   0x7   : > { %p74_p2 = scmp.eq.s32.totalorder %s1690_s18, 0  ;;  %p79_p3 = scmp.ne.s32.totalorder %s1682_s16, %s1678_s15 }
   0x8   : > { %s1761_s23 = scalar_select %p64_p0, %s1686_s17, %s66_s22  }
   0x9   : > { %p1763_p4 = por %p74_p2, %p73_p1  ;;  %p2216_p5 = scmp.eq.s32.totalorder %s1748_s19, 0 }
   0xa   : > { %p1277_p6 = scmp.ge.s32.totalorder %s1690_s18, 1  ;;  %p137_p7 = scmp.lt.s32.totalorder %s1690_s18, 4 }
   0xb   : > { %p1772_p8 = por %p2216_p5, %p79_p3  ;;  %s1692_s27 = smov [#allocation3]  }
   0xc   : > { %p1777_p10 = pnand %p1277_p6, %p137_p7  ;;  %s149_s28 = sshll.u32 %s1692_s27, 4  ;;  %s150_s28 = int_to_ptr.vmem [resolvable:$true] %s149_s28 }
   0xd   : > { %s2224_s25 = scalar_select %p1772_p8, 1, 0 }
   0xe   : > { %s2225_s26 = scalar_select %p1777_p10, 1, 0 }
   0xf   : > { %p1365_p11 = pneg %p1777_p10  ;;  %p1381_p13 = scmp.lt.s32.totalorder %s1690_s18, 3 }
  0x10   : > { %s1502_s7 = scalar_lea.hbm %s2211_s0, 4096 }
  0x11   : > { %p1785_p12 = pnand %p1365_p11, %p2216_p5  ;;  %p1792_p0 = pnand %p1381_p13, %p1763_p4 }
  0x12   : > { %p1503_p1 = scmp.ne.s32.totalorder %s2211_s0, %s1502_s7  ;;  %p1509_p4 = scmp.lt.u32.totalorder %s1502_s7, %s2211_s0 }
  0x13   : > { %s2227_s30 = scalar_select %p1792_p0, 1, 0 }
  0x14   : > { %p2220_p2 = pneg %p1785_p12 }
  0x16   : > { %p1505_p3 = pnand %p2220_p2, %p1503_p1 }
  0x18   : > { %p1506_p6 = pneg %p1505_p3 }
  0x1a   : > { %p1511_p7 = pnand %p1509_p4, %p1506_p6 }
  0x1c   : > { %1514 = shalt.err (!%p1511_p7)
}
  0x1d   : > { %s1515_s12 = scalar_lea.vmem %s150_s28, 4096  ;;  %p1523_p5 = scmp.lt.s32.totalorder %s150_s28, %s150_s28 }
  0x1e   : > { %p1516_p11 = scmp.ne.s32.totalorder %s150_s28, %s1515_s12  ;;  %p1524_p8 = scmp.lt.s32.totalorder %s1515_s12, %s1515_s12 }
  0x20   : > { %p1518_p13 = pnand %p1516_p11, %p2220_p2  ;;  %p1525_p10 = por %p1524_p8, %p1523_p5 }
  0x22   : > { %p1519_p9 = pneg %p1518_p13 }
  0x24   : > { %p1526_p0 = pnand %p1525_p10, %p1519_p9 }
  0x26   : > { %1529 = shalt.err (!%p1526_p0)
}
  0x27   : > { %s1693_s13 = smov 256   ;;  %s1694_s14 = smov 16  }
  0x28   : > { %1368 = dma.hbm_to_vmem [thread:$0]  (!%p1785_p12), %s2211_s0, 4096, %s150_s28, [#allocation4], %s1693_s13, %s1693_s13, %s1694_s14  }
  0x29   : > { %s176_s22 = sand.u32 1, %s1690_s18   ;;  %s178_s24 = sand.u32 1, %s1686_s17  }
  0x2a   : > { %s1820_s27 = sshll.u32 %s178_s24, 7  ;;  %s1347_s5 = sshll.u32 %s1690_s18, 11 }
  0x2b   : > { %s1828_s8 = scalar_lea.hbm %s2213_s2, %s1347_s5  ;;  %s180_s9 = scalar_lea.vmem [#allocation8], %s1820_s27 }
  0x2c   : > { %s187_s10 = sshll.u32 %s180_s9, 4  ;;  %s1695_s28 = smov [#allocation6]   ;;  %s1831_s10 = int_to_ptr.vmem [resolvable:$true] %s187_s10 }
  0x2d   : > { %s1833_s11 = sshll.u32 %s1695_s28, 4  ;;  %s1835_s12 = scalar_lea.sflag [#allocation4], %s176_s22  ;;  %s163_s11 = int_to_ptr.vmem [resolvable:$true] %s1833_s11 }
  0x2e   : > { %s1530_s13 = scalar_lea.hbm %s1828_s8, 2048  ;;  %p2228_p8 = scmp.ne.s32.totalorder %s2227_s30, 0 }
  0x2f   : > { %p1531_p5 = scmp.ne.s32.totalorder %s1828_s8, %s1530_s13  ;;  %s1535_s21 = scalar_lea.hbm %s2213_s2, 6144 }
  0x30   : > { %p2221_p9 = pneg %p2228_p8  ;;  %p1536_p1 = scmp.lt.u32.totalorder %s1828_s8, %s2213_s2 }
  0x31   : > { %p1537_p3 = scmp.lt.u32.totalorder %s1535_s21, %s1530_s13  ;;  %p1539_p4 = scmp.lt.u32.totalorder %s1530_s13, %s1828_s8 }
  0x32   : > { %p1533_p10 = pnand %p2221_p9, %p1531_p5 }
  0x33   : > { %p1538_p6 = por %p1537_p3, %p1536_p1 }
  0x34   : > { %p1534_p0 = pneg %p1533_p10 }
  0x35   : > { %p1540_p7 = por %p1539_p4, %p1538_p6 }
  0x37   : > { %p1541_p11 = pnand %p1540_p7, %p1534_p0 }
  0x39   : > { %1544 = shalt.err (!%p1541_p11)
}
  0x3a   : > { %s1545_s22 = scalar_lea.vmem %s1831_s10, 2048  ;;  %s1696_s7 = smov [#allocation8]  }
  0x3b   : > { %p1546_p13 = scmp.ne.s32.totalorder %s1831_s10, %s1545_s22  ;;  %s1550_s9 = sshll.u32 %s1696_s7, 4  ;;  %s1551_s9 = int_to_ptr.vmem [resolvable:$false] %s1550_s9 }
  0x3c   : > { %s1552_s28 = scalar_lea.vmem %s1551_s9, 4096  ;;  %p1553_p2 = scmp.lt.s32.totalorder %s1831_s10, %s1551_s9 }
  0x3d   : > { %p1548_p5 = pnand %p1546_p13, %p2221_p9  ;;  %p1554_p1 = scmp.lt.s32.totalorder %s1552_s28, %s1545_s22 }
  0x3f   : > { %p1549_p10 = pneg %p1548_p5  ;;  %p1555_p3 = por %p1554_p1, %p1553_p2 }
  0x41   : > { %p1556_p6 = pnand %p1555_p3, %p1549_p10 }
  0x43   : > { %1559 = shalt.err (!%p1556_p6)
}
  0x44   : > { %s1697_s13 = smov 128   ;;  %s1698_s14 = smov 8  }
  0x45   : > { %1375 = dma.hbm_to_vmem [thread:$0]  (!%p2228_p8), %s1828_s8, 2048, %s1831_s10, %s1835_s12, %s1697_s13, %s1697_s13, %s1698_s14  }
  0x46   : > { %s1560_s24 = scalar_lea.hbm %s2212_s1, 4096  ;;  %p2229_p0 = pneg %p1785_p12 }
  0x47   : > { %p1561_p2 = scmp.ne.s32.totalorder %s2212_s1, %s1560_s24  ;;  %p1567_p11 = scmp.lt.u32.totalorder %s1560_s24, %s2212_s1 }
  0x49   : > { %p1563_p4 = pnand %p1561_p2, %p2229_p0 }
  0x4b   : > { %p1564_p7 = pneg %p1563_p4 }
  0x4d   : > { %p1569_p13 = pnand %p1567_p11, %p1564_p7 }
  0x4f   : > { %1572 = shalt.err (!%p1569_p13)
}
  0x50   : > { %s1573_s8 = scalar_lea.vmem %s163_s11, 4096  ;;  %p2230_p10 = pmov %p2229_p0 }
  0x51   : > { %p1574_p5 = scmp.ne.s32.totalorder %s163_s11, %s1573_s8  ;;  %p1581_p6 = scmp.lt.s32.totalorder %s163_s11, %s163_s11 }
  0x52   : > { %p1582_p9 = scmp.lt.s32.totalorder %s1573_s8, %s1573_s8 }
  0x53   : > { %p1576_p1 = pnand %p1574_p5, %p2230_p10 }
  0x54   : > { %p1583_p8 = por %p1582_p9, %p1581_p6 }
  0x55   : > { %p1577_p3 = pneg %p1576_p1 }
  0x57   : > { %p1584_p0 = pnand %p1583_p8, %p1577_p3 }
  0x59   : > { %1587 = shalt.err (!%p1584_p0)
}
  0x5a   : > { %1371 = dma.hbm_to_vmem [thread:$0]  (!%p1785_p12), %s2212_s1, 4096, %s163_s11, [#allocation7], %s1697_s13, %s1697_s13, %s1698_s14  }
  0x5b   : > { %s1895_s24 = scalar_lea.hbm %s2214_s3, %s1347_s5  ;;  %s201_s29 = scalar_lea.vmem [#allocation9], %s1820_s27 }
  0x5c   : > { %s208_s6 = sshll.u32 %s201_s29, 4  ;;  %s1588_s22 = scalar_lea.hbm %s1895_s24, 2048  ;;  %s1898_s6 = int_to_ptr.vmem [resolvable:$true] %s208_s6 }
  0x5d   : > { %p1589_p8 = scmp.ne.s32.totalorder %s1895_s24, %s1588_s22  ;;  %p2231_p9 = scmp.ne.s32.totalorder %s2227_s30, 0 }
  0x5e   : > { %s1593_s7 = scalar_lea.hbm %s2214_s3, 6144  ;;  %p1594_p7 = scmp.lt.u32.totalorder %s1895_s24, %s2214_s3 }
  0x5f   : > { %p2232_p2 = pneg %p2231_p9  ;;  %p1595_p11 = scmp.lt.u32.totalorder %s1593_s7, %s1588_s22 }
  0x60   : > { %p1597_p5 = scmp.lt.u32.totalorder %s1588_s22, %s1895_s24 }
  0x61   : > { %p1591_p4 = pnand %p1589_p8, %p2232_p2  ;;  %p1596_p13 = por %p1595_p11, %p1594_p7 }
  0x63   : > { %p1592_p12 = pneg %p1591_p4  ;;  %p1598_p10 = por %p1597_p5, %p1596_p13 }
  0x65   : > { %p1599_p1 = pnand %p1598_p10, %p1592_p12 }
  0x67   : > { %1602 = shalt.err (!%p1599_p1)
}
  0x68   : > { %s1603_s27 = scalar_lea.vmem %s1898_s6, 2048  ;;  %p2233_p6 = pmov %p2232_p2 }
  0x69   : > { %p1604_p3 = scmp.ne.s32.totalorder %s1898_s6, %s1603_s27  ;;  %s1699_s8 = smov [#allocation9]  }
  0x6a   : > { %s1608_s10 = sshll.u32 %s1699_s8, 4  ;;  %s1609_s10 = int_to_ptr.vmem [resolvable:$false] %s1608_s10 }
  0x6b   : > { %p1606_p0 = pnand %p1604_p3, %p2233_p6  ;;  %s1610_s28 = scalar_lea.vmem %s1609_s10, 4096 }
  0x6c   : > { %p1611_p2 = scmp.lt.s32.totalorder %s1898_s6, %s1609_s10  ;;  %p1612_p4 = scmp.lt.s32.totalorder %s1610_s28, %s1603_s27 }
  0x6d   : > { %p1607_p8 = pneg %p1606_p0 }
  0x6e   : > { %p1613_p7 = por %p1612_p4, %p1611_p2 }
  0x70   : > { %p1614_p11 = pnand %p1613_p7, %p1607_p8 }
  0x72   : > { %1617 = shalt.err (!%p1614_p11)
}
  0x73   : > { %1378 = dma.hbm_to_vmem [thread:$0]  (!%p2231_p9), %s1895_s24, 2048, %s1898_s6, %s1835_s12, %s1697_s13, %s1697_s13, %s1698_s14  }
  0x74   : > { %p2234_p12 = scmp.ne.s32.totalorder %s2225_s26, 0 }
  0x75   : > { %p2235_p13 = scmp.eq.s32.totalorder (!%p2234_p12), %s1748_s19, 0 }
  0x76   : > { %220 = sbr.rel (%p2234_p12) target bundleno = 846 (0x34e), region = 36 }
  0x7d   : > { %1661 = dma.done.wait (%p2235_p13), [#allocation4], 4096   ;;  %p2236_p5 = pmov %p2235_p13 }
  0x7f   : > { %1663 = vsyncadd (%p2236_p5), [#allocation4], 4294963200  ;;  %p2237_p10 = pmov %p2236_p5 }
  0x80   : > { %p2238_p1 = pmov %p2236_p5 }
  0x81   : > { %1665 = dma.done.wait (%p2237_p10), [#allocation7], 4096  }
  0x82   : > { %1667 = vsyncadd (%p2238_p1), [#allocation7], 4294963200  ;;  %s230_s30 = sand.u32 1, %s1748_s19   ;;  %s232_s12 = sand.u32 1, %s1682_s16  }
  0x83   : > { %s1290_s13 = sshll.u32 %s232_s12, 7  ;;  %s231_s26 = scalar_lea.sflag [#allocation4], %s230_s30 }
  0x84   : > { %s1939_s14 = scalar_lea.vmem [#allocation8], %s1290_s13  ;;  %p2239_p9 = scmp.ne.s32.totalorder %s2224_s25, 0 }
  0x86   : > { %1669 = dma.done.wait (%p2239_p9), %s231_s26, 4096  }
  0x87   : > { %1671 = vsyncadd (%p2239_p9), %s231_s26, 4294963200  ;;  %s1945_s15 = scalar_lea.vmem [#allocation9], %s1290_s13  ;;  %p2240_p3 = scmp.ne.s32.totalorder %s1748_s19, 0 }
  0x88   : > { %v272_v0 = vld [vmem:[#allocation3] sm:$0xff] (!%p2240_p3)  ;;  %v273_v1 = vld [vmem:[#allocation3 + $0x8] sm:$0xff] (!%p2240_p3)  ;;  %v274_v2 = vld [vmem:[#allocation3 + $0x10] sm:$0xff] (!%p2240_p3) }
  0x89   : > { %271 = sbr.rel (%p2240_p3) target bundleno = 153 (0x99), region = 56  ;;  %304 = vst [vmem:[#allocation10] sm:$0xff] (!%p2240_p3), %v272_v0  ;;  %305 = vst [vmem:[#allocation10 + $0x8] sm:$0xff] (!%p2240_p3), %v273_v1  ;;  %v275_v3 = vld [vmem:[#allocation3 + $0x18] sm:$0xff] (!%p2240_p3)  ;;  %v276_v4 = vld [vmem:[#allocation3 + $0x20] sm:$0xff] (!%p2240_p3) }
  0x8a   : > { %306 = vst [vmem:[#allocation10 + $0x10] sm:$0xff] (!%p2240_p3), %v274_v2  ;;  %v277_v5 = vld [vmem:[#allocation3 + $0x28] sm:$0xff] (!%p2240_p3)  ;;  %307 = vst [vmem:[#allocation10 + $0x18] sm:$0xff] (!%p2240_p3), %v275_v3  ;;  %v278_v6 = vld [vmem:[#allocation3 + $0x30] sm:$0xff] (!%p2240_p3) }
  0x8b   : > { %308 = vst [vmem:[#allocation10 + $0x20] sm:$0xff] (!%p2240_p3), %v276_v4  ;;  %309 = vst [vmem:[#allocation10 + $0x28] sm:$0xff] (!%p2240_p3), %v277_v5  ;;  %v279_v7 = vld [vmem:[#allocation3 + $0x38] sm:$0xff] (!%p2240_p3)  ;;  %v280_v8 = vld [vmem:[#allocation3 + $0x40] sm:$0xff] (!%p2240_p3) }
  0x8c   : > { %310 = vst [vmem:[#allocation10 + $0x30] sm:$0xff] (!%p2240_p3), %v278_v6  ;;  %311 = vst [vmem:[#allocation10 + $0x38] sm:$0xff] (!%p2240_p3), %v279_v7  ;;  %v281_v9 = vld [vmem:[#allocation3 + $0x48] sm:$0xff] (!%p2240_p3)  ;;  %v282_v10 = vld [vmem:[#allocation3 + $0x50] sm:$0xff] (!%p2240_p3) }
  0x8d   : > { %312 = vst [vmem:[#allocation10 + $0x40] sm:$0xff] (!%p2240_p3), %v280_v8  ;;  %v283_v11 = vld [vmem:[#allocation3 + $0x58] sm:$0xff] (!%p2240_p3)  ;;  %313 = vst [vmem:[#allocation10 + $0x48] sm:$0xff] (!%p2240_p3), %v281_v9  ;;  %v284_v12 = vld [vmem:[#allocation3 + $0x60] sm:$0xff] (!%p2240_p3) }
  0x8e   : > { %314 = vst [vmem:[#allocation10 + $0x50] sm:$0xff] (!%p2240_p3), %v282_v10  ;;  %315 = vst [vmem:[#allocation10 + $0x58] sm:$0xff] (!%p2240_p3), %v283_v11  ;;  %v285_v13 = vld [vmem:[#allocation3 + $0x68] sm:$0xff] (!%p2240_p3)  ;;  %v286_v14 = vld [vmem:[#allocation3 + $0x70] sm:$0xff] (!%p2240_p3) }
  0x8f   : > { %316 = vst [vmem:[#allocation10 + $0x60] sm:$0xff] (!%p2240_p3), %v284_v12  ;;  %317 = vst [vmem:[#allocation10 + $0x68] sm:$0xff] (!%p2240_p3), %v285_v13  ;;  %v287_v15 = vld [vmem:[#allocation3 + $0x78] sm:$0xff] (!%p2240_p3)  ;;  %v288_v16 = vld [vmem:[#allocation3 + $0x80] sm:$0xff] (!%p2240_p3) }
  0x90   : > { %318 = vst [vmem:[#allocation10 + $0x70] sm:$0xff] %v286_v14  ;;  %v289_v17 = vld [vmem:[#allocation3 + $0x88] sm:$0xff]  ;;  %319 = vst [vmem:[#allocation10 + $0x78] sm:$0xff] %v287_v15  ;;  %v290_v18 = vld [vmem:[#allocation3 + $0x90] sm:$0xff] }
  0x91   : > { %320 = vst [vmem:[#allocation10 + $0x80] sm:$0xff] %v288_v16  ;;  %321 = vst [vmem:[#allocation10 + $0x88] sm:$0xff] %v289_v17  ;;  %v291_v19 = vld [vmem:[#allocation3 + $0x98] sm:$0xff]  ;;  %v292_v20 = vld [vmem:[#allocation3 + $0xa0] sm:$0xff] }
  0x92   : > { %322 = vst [vmem:[#allocation10 + $0x90] sm:$0xff] %v290_v18  ;;  %323 = vst [vmem:[#allocation10 + $0x98] sm:$0xff] %v291_v19  ;;  %v293_v21 = vld [vmem:[#allocation3 + $0xa8] sm:$0xff]  ;;  %v294_v22 = vld [vmem:[#allocation3 + $0xb0] sm:$0xff] }
  0x93   : > { %324 = vst [vmem:[#allocation10 + $0xa0] sm:$0xff] %v292_v20  ;;  %v295_v23 = vld [vmem:[#allocation3 + $0xb8] sm:$0xff]  ;;  %325 = vst [vmem:[#allocation10 + $0xa8] sm:$0xff] %v293_v21  ;;  %v296_v24 = vld [vmem:[#allocation3 + $0xc0] sm:$0xff] }
  0x94   : > { %326 = vst [vmem:[#allocation10 + $0xb0] sm:$0xff] %v294_v22  ;;  %327 = vst [vmem:[#allocation10 + $0xb8] sm:$0xff] %v295_v23  ;;  %v297_v25 = vld [vmem:[#allocation3 + $0xc8] sm:$0xff]  ;;  %v298_v26 = vld [vmem:[#allocation3 + $0xd0] sm:$0xff] }
  0x95   : > { %328 = vst [vmem:[#allocation10 + $0xc0] sm:$0xff] %v296_v24  ;;  %329 = vst [vmem:[#allocation10 + $0xc8] sm:$0xff] %v297_v25  ;;  %v299_v27 = vld [vmem:[#allocation3 + $0xd8] sm:$0xff]  ;;  %v300_v28 = vld [vmem:[#allocation3 + $0xe0] sm:$0xff] }
  0x96   : > { %330 = vst [vmem:[#allocation10 + $0xd0] sm:$0xff] %v298_v26  ;;  %v301_v29 = vld [vmem:[#allocation3 + $0xe8] sm:$0xff]  ;;  %331 = vst [vmem:[#allocation10 + $0xd8] sm:$0xff] %v299_v27  ;;  %v302_v30 = vld [vmem:[#allocation3 + $0xf0] sm:$0xff] }
  0x97   : > { %332 = vst [vmem:[#allocation10 + $0xe0] sm:$0xff] %v300_v28  ;;  %333 = vst [vmem:[#allocation10 + $0xe8] sm:$0xff] %v301_v29  ;;  %v303_v31 = vld [vmem:[#allocation3 + $0xf8] sm:$0xff] }
  0x98   : > { %334 = vst [vmem:[#allocation10 + $0xf0] sm:$0xff] %v302_v30  ;;  %335 = vst [vmem:[#allocation10 + $0xf8] sm:$0xff] %v303_v31 }
  0x99 PF: > { %v1430_v32 = vld [vmem:[#allocation6 + $0x4] ss:$8 sps:$4 sm:$0xff]   ;;  %v1432_v33 = vld [vmem:[#allocation6] ss:$8 sps:$4 sm:$0xff]   ;;  %v1433_v34 = vld [vmem:[#allocation6 + $0x14] ss:$8 sps:$4 sm:$0xff]  }
  0x9a   : > { %576 = vmatprep.subr.bf16.mxu0 %v1430_v32  ;;  %v1435_v35 = vld [vmem:[#allocation6 + $0x10] ss:$8 sps:$4 sm:$0xff]   ;;  %v1436_v36 = vld [vmem:[#allocation6 + $0x24] ss:$8 sps:$4 sm:$0xff]   ;;  %v1438_v37 = vld [vmem:[#allocation6 + $0x20] ss:$8 sps:$4 sm:$0xff]  }
  0x9b   : > { %577 = vmatpush1.bf16.msra.mxu0 %v1432_v33  ;;  %v1439_v38 = vld [vmem:[#allocation6 + $0x34] ss:$8 sps:$4 sm:$0xff]   ;;  %v1441_v39 = vld [vmem:[#allocation6 + $0x30] ss:$8 sps:$4 sm:$0xff]   ;;  %v1442_v40 = vld [vmem:[#allocation6 + $0x44] ss:$8 sps:$4 sm:$0xff]  }
  0x9c   : > { %578 = vmatprep.subr.bf16.mxu0 %v1433_v34  ;;  %v1444_v41 = vld [vmem:[#allocation6 + $0x40] ss:$8 sps:$4 sm:$0xff]   ;;  %v1445_v42 = vld [vmem:[#allocation6 + $0x54] ss:$8 sps:$4 sm:$0xff]   ;;  %v1447_v43 = vld [vmem:[#allocation6 + $0x50] ss:$8 sps:$4 sm:$0xff]  }
  0x9d   : > { %v1448_v44 = vld [vmem:[#allocation6 + $0x64] ss:$8 sps:$4 sm:$0xff]   ;;  %v339_v46 = vld [vmem:[#allocation10 + $0x18] sm:$0xff]  ;;  %v1450_v48 = vld [vmem:[#allocation6 + $0x60] ss:$8 sps:$4 sm:$0xff]   ;;  %p1341_p6 = scmp.ge.s32.totalorder %s1748_s19, 2 }
  0x9e   : > { %v337_v45 = vld [vmem:[#allocation10 + $0x8] sm:$0xff]  ;;  %v1451_v49 = vld [vmem:[#allocation6 + $0x74] ss:$8 sps:$4 sm:$0xff]   ;;  %v1453_v50 = vld [vmem:[#allocation6 + $0x70] ss:$8 sps:$4 sm:$0xff]  }
  0x9f   : > { %579 = vmatpush1.bf16.msra.mxu0 %v1435_v35  ;;  %v1949_v47 = vpack.c.bf16 %v339_v46, %v337_v45  ;;  %v1454_v51 = vld [vmem:[#allocation6 + $0x84] ss:$8 sps:$4 sm:$0xff]   ;;  %v1456_v52 = vld [vmem:[#allocation6 + $0x80] ss:$8 sps:$4 sm:$0xff]   ;;  %v1457_v53 = vld [vmem:[#allocation6 + $0x94] ss:$8 sps:$4 sm:$0xff]  }
  0xa0   : > { %580 = vmatprep.subr.bf16.mxu0 %v1436_v36  ;;  %v1459_v54 = vld [vmem:[#allocation6 + $0x90] ss:$8 sps:$4 sm:$0xff]   ;;  %v1460_v55 = vld [vmem:[#allocation6 + $0xa4] ss:$8 sps:$4 sm:$0xff]   ;;  %v1462_v56 = vld [vmem:[#allocation6 + $0xa0] ss:$8 sps:$4 sm:$0xff]  }
  0xa1   : > { %608 = vmatprep.mubr.bf16.mxu0 %v1949_v47  ;;  %v1463_v57 = vld [vmem:[#allocation6 + $0xb4] ss:$8 sps:$4 sm:$0xff]   ;;  %v1465_v58 = vld [vmem:[#allocation6 + $0xb0] ss:$8 sps:$4 sm:$0xff]   ;;  %v1466_v59 = vld [vmem:[#allocation6 + $0xc4] ss:$8 sps:$4 sm:$0xff]  }
  0xa2   : > { %v1468_v60 = vld [vmem:[#allocation6 + $0xc0] ss:$8 sps:$4 sm:$0xff]   ;;  %v1469_v61 = vld [vmem:[#allocation6 + $0xd4] ss:$8 sps:$4 sm:$0xff]   ;;  %v1471_v62 = vld [vmem:[#allocation6 + $0xd0] ss:$8 sps:$4 sm:$0xff]  }
  0xa3   : > { %581 = vmatpush1.bf16.msra.mxu0 %v1438_v37  ;;  %v1472_v63 = vld [vmem:[#allocation6 + $0xe4] ss:$8 sps:$4 sm:$0xff]   ;;  %v1474_v0 = vld [vmem:[#allocation6 + $0xe0] ss:$8 sps:$4 sm:$0xff]   ;;  %v1475_v1 = vld [vmem:[#allocation6 + $0xf4] ss:$8 sps:$4 sm:$0xff]  }
  0xa4   : > { %582 = vmatprep.subr.bf16.mxu0 %v1439_v38  ;;  %v1477_v2 = vld [vmem:[#allocation6 + $0xf0] ss:$8 sps:$4 sm:$0xff]   ;;  %v336_v3 = vld [vmem:[#allocation10] sm:$0xff]  ;;  %v341_v5 = vld [vmem:[#allocation10 + $0x28] sm:$0xff] }
  0xa5   : > { %v338_v4 = vld [vmem:[#allocation10 + $0x10] sm:$0xff]  ;;  %v343_v6 = vld [vmem:[#allocation10 + $0x38] sm:$0xff]  ;;  %v340_v9 = vld [vmem:[#allocation10 + $0x20] sm:$0xff] }
  0xa6   : > { %v1952_v7 = vpack.c.bf16 %v338_v4, %v336_v3  ;;  %v1954_v8 = vpack.c.bf16 %v343_v6, %v341_v5  ;;  %v342_v10 = vld [vmem:[#allocation10 + $0x30] sm:$0xff]  ;;  %v345_v11 = vld [vmem:[#allocation10 + $0x48] sm:$0xff]  ;;  %v347_v12 = vld [vmem:[#allocation10 + $0x58] sm:$0xff] }
  0xa7   : > { %583 = vmatpush1.bf16.msra.mxu0 %v1441_v39  ;;  %v1958_v13 = vpack.c.bf16 %v342_v10, %v340_v9  ;;  %v1960_v14 = vpack.c.bf16 %v347_v12, %v345_v11  ;;  %v344_v15 = vld [vmem:[#allocation10 + $0x40] sm:$0xff]  ;;  %v346_v16 = vld [vmem:[#allocation10 + $0x50] sm:$0xff]  ;;  %v349_v17 = vld [vmem:[#allocation10 + $0x68] sm:$0xff] }
  0xa8   : > { %584 = vmatprep.subr.bf16.mxu0 %v1442_v40  ;;  %v351_v18 = vld [vmem:[#allocation10 + $0x78] sm:$0xff]  ;;  %v1964_v19 = vpack.c.bf16 %v346_v16, %v344_v15  ;;  %v348_v21 = vld [vmem:[#allocation10 + $0x60] sm:$0xff]  ;;  %v350_v22 = vld [vmem:[#allocation10 + $0x70] sm:$0xff]  ;;  %v1700_v15 = vmov 0  }
  0xa9   : > { %v1966_v20 = vpack.c.bf16 %v351_v18, %v349_v17  ;;  %v353_v23 = vld [vmem:[#allocation10 + $0x88] sm:$0xff]  ;;  %v355_v24 = vld [vmem:[#allocation10 + $0x98] sm:$0xff]  ;;  %v1970_v25 = vpack.c.bf16 %v350_v22, %v348_v21  ;;  %v352_v27 = vld [vmem:[#allocation10 + $0x80] sm:$0xff]  ;;  %1428 = vset.pattern.permute.xlu0 %v1700_v15  ;;  %1429 = vset.pattern.permute.xlu1 %v1700_v15 }
  0xaa   : > { %v1972_v26 = vpack.c.bf16 %v355_v24, %v353_v23  ;;  %v354_v28 = vld [vmem:[#allocation10 + $0x90] sm:$0xff]  ;;  %v357_v29 = vld [vmem:[#allocation10 + $0xa8] sm:$0xff]  ;;  %v359_v30 = vld [vmem:[#allocation10 + $0xb8] sm:$0xff] }
  0xab   : > { %585 = vmatpush1.bf16.msra.mxu0 %v1444_v41  ;;  %v1976_v31 = vpack.c.bf16 %v354_v28, %v352_v27  ;;  %v1978_v32 = vpack.c.bf16 %v359_v30, %v357_v29  ;;  %v356_v33 = vld [vmem:[#allocation10 + $0xa0] sm:$0xff]  ;;  %v358_v34 = vld [vmem:[#allocation10 + $0xb0] sm:$0xff]  ;;  %v361_v35 = vld [vmem:[#allocation10 + $0xc8] sm:$0xff] }
  0xac   : > { %586 = vmatprep.subr.bf16.mxu0 %v1445_v42  ;;  %v363_v36 = vld [vmem:[#allocation10 + $0xd8] sm:$0xff]  ;;  %v1982_v37 = vpack.c.bf16 %v358_v34, %v356_v33  ;;  %v360_v39 = vld [vmem:[#allocation10 + $0xc0] sm:$0xff]  ;;  %v362_v40 = vld [vmem:[#allocation10 + $0xd0] sm:$0xff] }
  0xad   : > { %v1984_v38 = vpack.c.bf16 %v363_v36, %v361_v35  ;;  %v365_v41 = vld [vmem:[#allocation10 + $0xe8] sm:$0xff]  ;;  %v367_v42 = vld [vmem:[#allocation10 + $0xf8] sm:$0xff]  ;;  %v364_v45 = vld [vmem:[#allocation10 + $0xe0] sm:$0xff] }
  0xae   : > { %v366_v46 = vld [vmem:[#allocation10 + $0xf0] sm:$0xff]  ;;  %v785_v9 = vld [vmem:[%s1945_s15] sm:$0xff]  ;;  %v786_v17 = vld [vmem:[%s1945_s15 + $0x8] sm:$0xff] }
  0xaf   : > { %587 = vmatpush1.bf16.msra.mxu0 %v1447_v43  ;;  %v1988_v43 = vpack.c.bf16 %v362_v40, %v360_v39  ;;  %v787_v10 = vld [vmem:[%s1945_s15 + $0x10] sm:$0xff]  ;;  %803 = vperm.xlu0 %1428, %v785_v9   ;;  %v788_v18 = vld [vmem:[%s1945_s15 + $0x18] sm:$0xff]  ;;  %v790_v23 = vld [vmem:[%s1945_s15 + $0x28] sm:$0xff] }
  0xb0   : > { %588 = vmatprep.subr.bf16.mxu0 %v1448_v44  ;;  %v1990_v44 = vpack.c.bf16 %v367_v42, %v365_v41  ;;  %813 = vperm.xlu1 %1429, %v787_v10   ;;  %v789_v24 = vld [vmem:[%s1945_s15 + $0x20] sm:$0xff]  ;;  %v792_v33 = vld [vmem:[%s1945_s15 + $0x38] sm:$0xff]  ;;  %v791_v34 = vld [vmem:[%s1945_s15 + $0x30] sm:$0xff] }
  0xb1   : > { %v794_v39 = vld [vmem:[%s1945_s15 + $0x48] sm:$0xff]  ;;  %v793_v40 = vld [vmem:[%s1945_s15 + $0x40] sm:$0xff] }
  0xb3   : > { %589 = vmatpush1.bf16.msra.mxu0 %v1450_v48  ;;  %v1994_v48 = vpack.c.bf16 %v366_v46, %v364_v45  ;;  %808 = vperm.xlu0 %1428, %v786_v17  }
  0xb4   : > { %590 = vmatprep.subr.bf16.mxu0 %v1451_v49  ;;  %v1480_v49 = vld [vmem:[%s1939_s14 + $0x4] ss:$8 sps:$4 sm:$0xff]   ;;  %818 = vperm.xlu1 %1429, %v788_v18  }
  0xb5   : > { %993 = vmatprep.mubr.bf16.mxu1 %v1480_v49  ;;  %v796_v49 = vld [vmem:[%s1945_s15 + $0x58] sm:$0xff] }
  0xb7   : > { %591 = vmatpush1.bf16.msra.mxu0 %v1453_v50  ;;  %823 = vperm.xlu0 %1428, %v789_v24  }
  0xb8   : > { %592 = vmatprep.subr.bf16.mxu0 %v1454_v51  ;;  %828 = vperm.xlu1 %1429, %v790_v23  }
  0xbb   : > { %593 = vmatpush1.bf16.msra.mxu0 %v1456_v52  ;;  %833 = vperm.xlu0 %1428, %v791_v34  }
  0xbc   : > { %594 = vmatprep.subr.bf16.mxu0 %v1457_v53  ;;  %838 = vperm.xlu1 %1429, %v792_v33  }
  0xbf   : > { %595 = vmatpush1.bf16.msra.mxu0 %v1459_v54  ;;  %843 = vperm.xlu0 %1428, %v793_v40  }
  0xc0   : > { %596 = vmatprep.subr.bf16.mxu0 %v1460_v55  ;;  %848 = vperm.xlu1 %1429, %v794_v39  }
  0xc3   : > { %597 = vmatpush1.bf16.msra.mxu0 %v1462_v56 }
  0xc4   : > { %598 = vmatprep.subr.bf16.mxu0 %v1463_v57  ;;  %858 = vperm.xlu1 %1429, %v796_v49  }
  0xc7   : > { %599 = vmatpush1.bf16.msra.mxu0 %v1465_v58 }
  0xc8   : > { %600 = vmatprep.subr.bf16.mxu0 %v1466_v59 }
  0xcb   : > { %601 = vmatpush1.bf16.msra.mxu0 %v1468_v60 }
  0xcc   : > { %602 = vmatprep.subr.bf16.mxu0 %v1469_v61 }
  0xcf   : > { %603 = vmatpush1.bf16.msra.mxu0 %v1471_v62 }
  0xd0   : > { %604 = vmatprep.subr.bf16.mxu0 %v1472_v63 }
  0xd3   : > { %605 = vmatpush1.bf16.msra.mxu0 %v1474_v0 }
  0xd4   : > { %606 = vmatprep.subr.bf16.mxu0 %v1475_v1 }
  0xd7   : > { %607 = vmatpush1.bf16.msra.mxu0 %v1477_v2 }
  0xda   : > { %609 = vmatmul.mubr.bf16.vlgmr.msra.gmra.mrb[0].mxu0 %v1952_v7 }
  0xdb   : > { %618 = vmatprep.mubr.bf16.mxu0 %v1954_v8 }
  0xe2   : > { %619 = vmatmul.mubr.bf16.gmra.mrb[4].mxu0 %v1958_v13 }
  0xe3   : > { %628 = vmatprep.mubr.bf16.mxu0 %v1960_v14 }
  0xea   : > { %629 = vmatmul.mubr.bf16.gmra.mrb[8].mxu0 %v1964_v19 }
  0xeb   : > { %638 = vmatprep.mubr.bf16.mxu0 %v1966_v20 }
  0xf2   : > { %639 = vmatmul.mubr.bf16.gmra.mrb[12].mxu0 %v1970_v25 }
  0xf3   : > { %648 = vmatprep.mubr.bf16.mxu0 %v1972_v26 }
  0xfa   : > { %649 = vmatmul.mubr.bf16.gmra.mrb[16].mxu0 %v1976_v31 }
  0xfb   : > { %658 = vmatprep.mubr.bf16.mxu0 %v1978_v32 }
 0x102   : > { %659 = vmatmul.mubr.bf16.gmra.mrb[20].mxu0 %v1982_v37 }
 0x103   : > { %668 = vmatprep.mubr.bf16.mxu0 %v1984_v38 }
 0x10a   : > { %669 = vmatmul.mubr.bf16.gmra.mrb[24].mxu0 %v1988_v43 }
 0x10b   : > { %678 = vmatprep.mubr.bf16.mxu0 %v1990_v44 }
 0x112   : > { %679 = vmatmul.mubr.bf16.gmra.mrb[28].mxu0 %v1994_v48 }
 0x12f   : > { %v814_v15 = vpop.permute.xlu1 %813 }
 0x1ad   : > { %v610_v50 = vpop.f32.mrb[0].mxu0 }
 0x1ae   : > { %v612_v51 = vpop.f32.mrb[1].mxu0 }
 0x1af   : > { %v614_v52 = vpop.f32.mrb[2].mxu0 }
 0x1b0   : > { %v689_v53 = vpack.c.bf16 %v614_v52, %v610_v50  ;;  %v616_v54 = vpop.f32.mrb[3].mxu0  ;;  %v795_v50 = vld [vmem:[%s1945_s15 + $0x50] sm:$0xff] }
 0x1b1   : > { %v690_v55 = vpack.c.bf16 %v616_v54, %v612_v51  ;;  %853 = vperm.xlu0 %1428, %v795_v50   ;;  %v797_v54 = vld [vmem:[%s1945_s15 + $0x60] sm:$0xff] }
 0x1b3   : > { %961 = vmatprep.subr.bf16.mxu1 %v690_v55 }
 0x1b4   : > { %962 = vmatpush1.bf16.msra.mxu1 %v689_v53  ;;  %v798_v53 = vld [vmem:[%s1945_s15 + $0x68] sm:$0xff] }
 0x1b5   : > { %v620_v56 = vpop.f32.mrb[4].mxu0  ;;  %868 = vperm.xlu1 %1429, %v798_v53   ;;  %863 = vperm.xlu0 %1428, %v797_v54  }
 0x1b6   : > { %v622_v57 = vpop.f32.mrb[5].mxu0 }
 0x1b7   : > { %v624_v58 = vpop.f32.mrb[6].mxu0 }
 0x1b8   : > { %v691_v59 = vpack.c.bf16 %v624_v58, %v620_v56  ;;  %v626_v60 = vpop.f32.mrb[7].mxu0 }
 0x1b9   : > { %v692_v61 = vpack.c.bf16 %v626_v60, %v622_v57  ;;  %v799_v60 = vld [vmem:[%s1945_s15 + $0x70] sm:$0xff] }
 0x1ba   : > { %873 = vperm.xlu0 %1428, %v799_v60  }
 0x1bb   : > { %963 = vmatprep.subr.bf16.mxu1 %v692_v61 }
 0x1bc   : > { %964 = vmatpush1.bf16.msra.mxu1 %v691_v59  ;;  %v800_v59 = vld [vmem:[%s1945_s15 + $0x78] sm:$0xff] }
 0x1bd   : > { %v630_v62 = vpop.f32.mrb[8].mxu0  ;;  %878 = vperm.xlu1 %1429, %v800_v59  }
 0x1be   : > { %v632_v63 = vpop.f32.mrb[9].mxu0 }
 0x1bf   : > { %v634_v0 = vpop.f32.mrb[10].mxu0 }
 0x1c0   : > { %v693_v1 = vpack.c.bf16 %v634_v0, %v630_v62  ;;  %v636_v2 = vpop.f32.mrb[11].mxu0 }
 0x1c1   : > { %v694_v3 = vpack.c.bf16 %v636_v2, %v632_v63 }
 0x1c3   : > { %965 = vmatprep.subr.bf16.mxu1 %v694_v3 }
 0x1c4   : > { %966 = vmatpush1.bf16.msra.mxu1 %v693_v1 }
 0x1c5   : > { %v640_v4 = vpop.f32.mrb[12].mxu0 }
 0x1c6   : > { %v642_v5 = vpop.f32.mrb[13].mxu0 }
 0x1c7   : > { %v644_v6 = vpop.f32.mrb[14].mxu0 }
 0x1c8   : > { %v695_v11 = vpack.c.bf16 %v644_v6, %v640_v4  ;;  %v646_v12 = vpop.f32.mrb[15].mxu0 }
 0x1c9   : > { %v696_v16 = vpack.c.bf16 %v646_v12, %v642_v5 }
 0x1cb   : > { %967 = vmatprep.subr.bf16.mxu1 %v696_v16 }
 0x1cc   : > { %968 = vmatpush1.bf16.msra.mxu1 %v695_v11 }
 0x1cd   : > { %v650_v21 = vpop.f32.mrb[16].mxu0 }
 0x1ce   : > { %v652_v22 = vpop.f32.mrb[17].mxu0 }
 0x1cf   : > { %v654_v27 = vpop.f32.mrb[18].mxu0 }
 0x1d0   : > { %v697_v28 = vpack.c.bf16 %v654_v27, %v650_v21  ;;  %v656_v29 = vpop.f32.mrb[19].mxu0 }
 0x1d1   : > { %v698_v30 = vpack.c.bf16 %v656_v29, %v652_v22  ;;  %v819_v22 = vpop.permute.xlu1 %818 }
 0x1d3   : > { %969 = vmatprep.subr.bf16.mxu1 %v698_v30 }
 0x1d4   : > { %970 = vmatpush1.bf16.msra.mxu1 %v697_v28 }
 0x1d5   : > { %v660_v35 = vpop.f32.mrb[20].mxu0 }
 0x1d6   : > { %v662_v36 = vpop.f32.mrb[21].mxu0 }
 0x1d7   : > { %v664_v41 = vpop.f32.mrb[22].mxu0 }
 0x1d8   : > { %v699_v42 = vpack.c.bf16 %v664_v41, %v660_v35  ;;  %v666_v45 = vpop.f32.mrb[23].mxu0 }
 0x1d9   : > { %v700_v46 = vpack.c.bf16 %v666_v45, %v662_v36  ;;  %v829_v36 = vpop.permute.xlu1 %828 }
 0x1db   : > { %971 = vmatprep.subr.bf16.mxu1 %v700_v46 }
 0x1dc   : > { %972 = vmatpush1.bf16.msra.mxu1 %v699_v42 }
 0x1dd   : > { %v670_v51 = vpop.f32.mrb[24].mxu0 }
 0x1de   : > { %v672_v52 = vpop.f32.mrb[25].mxu0 }
 0x1df   : > { %v674_v55 = vpop.f32.mrb[26].mxu0 }
 0x1e0   : > { %v701_v56 = vpack.c.bf16 %v674_v55, %v670_v51  ;;  %v676_v57 = vpop.f32.mrb[27].mxu0 }
 0x1e1   : > { %v702_v58 = vpack.c.bf16 %v676_v57, %v672_v52  ;;  %v839_v52 = vpop.permute.xlu1 %838 }
 0x1e3   : > { %973 = vmatprep.subr.bf16.mxu1 %v702_v58 }
 0x1e4   : > { %974 = vmatpush1.bf16.msra.mxu1 %v701_v56 }
 0x1e5   : > { %v680_v61 = vpop.f32.mrb[28].mxu0 }
 0x1e6   : > { %v682_v62 = vpop.f32.mrb[29].mxu0 }
 0x1e7   : > { %v684_v63 = vpop.f32.mrb[30].mxu0 }
 0x1e8   : > { %v703_v0 = vpack.c.bf16 %v684_v63, %v680_v61  ;;  %v686_v1 = vpop.f32.mrb[31].mxu0 }
 0x1e9   : > { %v704_v2 = vpack.c.bf16 %v686_v1, %v682_v62  ;;  %v849_v62 = vpop.permute.xlu1 %848 }
 0x1eb   : > { %975 = vmatprep.subr.bf16.mxu1 %v704_v2 }
 0x1ec   : > { %976 = vmatpush1.bf16.msra.mxu1 %v703_v0 }
 0x1ed   : > { %977 = vmatprep.subr.bf16.mxu1 %v1949_v47  ;;  %v1478_v47 = vld [vmem:[%s1939_s14] ss:$8 sps:$4 sm:$0xff]  }
 0x1f0   : > { %978 = vmatpush1.bf16.msra.mxu1 %v1952_v7  ;;  %v1481_v7 = vld [vmem:[%s1939_s14 + $0x14] ss:$8 sps:$4 sm:$0xff]  }
 0x1f1   : > { %979 = vmatprep.subr.bf16.mxu1 %v1954_v8  ;;  %v1483_v8 = vld [vmem:[%s1939_s14 + $0x10] ss:$8 sps:$4 sm:$0xff]  }
 0x1f4   : > { %980 = vmatpush1.bf16.msra.mxu1 %v1958_v13  ;;  %v1484_v13 = vld [vmem:[%s1939_s14 + $0x24] ss:$8 sps:$4 sm:$0xff]  }
 0x1f5   : > { %981 = vmatprep.subr.bf16.mxu1 %v1960_v14  ;;  %v1486_v14 = vld [vmem:[%s1939_s14 + $0x20] ss:$8 sps:$4 sm:$0xff]  }
 0x1f8   : > { %982 = vmatpush1.bf16.msra.mxu1 %v1964_v19  ;;  %v1487_v19 = vld [vmem:[%s1939_s14 + $0x34] ss:$8 sps:$4 sm:$0xff]  }
 0x1f9   : > { %983 = vmatprep.subr.bf16.mxu1 %v1966_v20  ;;  %v1489_v20 = vld [vmem:[%s1939_s14 + $0x30] ss:$8 sps:$4 sm:$0xff]  }
 0x1fc   : > { %984 = vmatpush1.bf16.msra.mxu1 %v1970_v25  ;;  %v1490_v25 = vld [vmem:[%s1939_s14 + $0x44] ss:$8 sps:$4 sm:$0xff]  }
 0x1fd   : > { %985 = vmatprep.subr.bf16.mxu1 %v1972_v26  ;;  %v1492_v26 = vld [vmem:[%s1939_s14 + $0x40] ss:$8 sps:$4 sm:$0xff]  }
 0x200   : > { %986 = vmatpush1.bf16.msra.mxu1 %v1976_v31  ;;  %v1493_v31 = vld [vmem:[%s1939_s14 + $0x54] ss:$8 sps:$4 sm:$0xff]  }
 0x201   : > { %987 = vmatprep.subr.bf16.mxu1 %v1978_v32  ;;  %v1495_v32 = vld [vmem:[%s1939_s14 + $0x50] ss:$8 sps:$4 sm:$0xff]  }
 0x204   : > { %988 = vmatpush1.bf16.msra.mxu1 %v1982_v37  ;;  %v1496_v37 = vld [vmem:[%s1939_s14 + $0x64] ss:$8 sps:$4 sm:$0xff]  }
 0x205   : > { %989 = vmatprep.subr.bf16.mxu1 %v1984_v38  ;;  %v1498_v38 = vld [vmem:[%s1939_s14 + $0x60] ss:$8 sps:$4 sm:$0xff]  }
 0x208   : > { %990 = vmatpush1.bf16.msra.mxu1 %v1988_v43  ;;  %v1499_v43 = vld [vmem:[%s1939_s14 + $0x74] ss:$8 sps:$4 sm:$0xff]  }
 0x209   : > { %991 = vmatprep.subr.bf16.mxu1 %v1990_v44  ;;  %v1501_v44 = vld [vmem:[%s1939_s14 + $0x70] ss:$8 sps:$4 sm:$0xff]  }
 0x20c   : > { %992 = vmatpush1.bf16.msra.mxu1 %v1994_v48  ;;  %v804_v48 = vpop.permute.xlu0 %803 }
 0x20f   : > { %994 = vmatmul.mubr.bf16.vlgmr.msra.gmra.mrb[0].mxu1 %v1478_v47 }
 0x210   : > { %1003 = vmatprep.mubr.bf16.mxu1 %v1481_v7  ;;  %v809_v4 = vpop.permute.xlu0 %808 }
 0x214   : > { %v824_v30 = vpop.permute.xlu0 %823 }
 0x217   : > { %1004 = vmatmul.mubr.bf16.gmra.mrb[4].mxu1 %v1483_v8 }
 0x218   : > { %1013 = vmatprep.mubr.bf16.mxu1 %v1484_v13  ;;  %v834_v46 = vpop.permute.xlu0 %833 }
 0x21c   : > { %v844_v58 = vpop.permute.xlu0 %843 }
 0x21f   : > { %1014 = vmatmul.mubr.bf16.gmra.mrb[8].mxu1 %v1486_v14 }
 0x220   : > { %1023 = vmatprep.mubr.bf16.mxu1 %v1487_v19  ;;  %v859_v19 = vpop.permute.xlu1 %858 }
 0x227   : > { %1024 = vmatmul.mubr.bf16.gmra.mrb[12].mxu1 %v1489_v20 }
 0x228   : > { %1033 = vmatprep.mubr.bf16.mxu1 %v1490_v25 }
 0x22f   : > { %1034 = vmatmul.mubr.bf16.gmra.mrb[16].mxu1 %v1492_v26 }
 0x230   : > { %1043 = vmatprep.mubr.bf16.mxu1 %v1493_v31  ;;  %v854_v7 = vpop.permute.xlu0 %853 }
 0x237   : > { %1044 = vmatmul.mubr.bf16.gmra.mrb[20].mxu1 %v1495_v32 }
 0x238   : > { %1053 = vmatprep.mubr.bf16.mxu1 %v1496_v37  ;;  %v864_v37 = vpop.permute.xlu0 %863 }
 0x23f   : > { %1054 = vmatmul.mubr.bf16.gmra.mrb[24].mxu1 %v1498_v38 }
 0x240   : > { %1063 = vmatprep.mubr.bf16.mxu1 %v1499_v43 }
 0x247   : > { %1064 = vmatmul.mubr.bf16.gmra.mrb[28].mxu1 %v1501_v44 }
 0x2e2   : > { %v995_v3 = vpop.f32.mrb[0].mxu1 }
 0x2e3   : > { %v2045_v5 = vadd.f32 %v995_v3, %v804_v48  ;;  %v997_v6 = vpop.f32.mrb[1].mxu1 }
 0x2e4   : > { %v2047_v9 = vadd.f32 %v997_v6, %v804_v48  ;;  %v999_v10 = vpop.f32.mrb[2].mxu1  ;;  %v869_v48 = vpop.permute.xlu1 %868 }
 0x2e5   : > { %v2049_v11 = vadd.f32 %v999_v10, %v809_v4  ;;  %v1001_v12 = vpop.f32.mrb[3].mxu1 }
 0x2e6   : > { %v2051_v16 = vadd.f32 %v1001_v12, %v809_v4 }
 0x2ea   : > { %v1005_v17 = vpop.f32.mrb[4].mxu1 }
 0x2eb   : > { %v2053_v18 = vadd.f32 %v1005_v17, %v814_v15  ;;  %v1007_v21 = vpop.f32.mrb[5].mxu1 }
 0x2ec   : > { %v2055_v23 = vadd.f32 %v1007_v21, %v814_v15  ;;  %v1009_v24 = vpop.f32.mrb[6].mxu1  ;;  %v874_v15 = vpop.permute.xlu0 %873 }
 0x2ed   : > { %v2057_v27 = vadd.f32 %v1009_v24, %v819_v22  ;;  %v1011_v28 = vpop.f32.mrb[7].mxu1  ;;  %v879_v24 = vpop.permute.xlu1 %878 }
 0x2ee   : > { %v2059_v29 = vadd.f32 %v1011_v28, %v819_v22 }
 0x2f2   : > { %v1015_v33 = vpop.f32.mrb[8].mxu1 }
 0x2f3   : > { %v2061_v34 = vadd.f32 %v1015_v33, %v824_v30  ;;  %v1017_v35 = vpop.f32.mrb[9].mxu1 }
 0x2f4   : > { %v2063_v39 = vadd.f32 %v1017_v35, %v824_v30  ;;  %v1019_v40 = vpop.f32.mrb[10].mxu1 }
 0x2f5   : > { %v2065_v41 = vadd.f32 %v1019_v40, %v829_v36  ;;  %v1021_v42 = vpop.f32.mrb[11].mxu1  ;;  %v1078_v40 = vmax.f32 (!%p1341_p6), %v2045_v5, 0.0 }
 0x2f6   : > { %v2067_v45 = vadd.f32 %v1021_v42, %v829_v36  ;;  %v1079_v42 = vmax.f32 (!%p1341_p6), %v2047_v9, 0.0 }
 0x2f7   : > { %1110 = vst [vmem:[#allocation10] sm:$0xff] (!%p1341_p6), %v1078_v40 }
 0x2f8   : > { %1111 = vst [vmem:[#allocation10 + $0x8] sm:$0xff] (!%p1341_p6), %v1079_v42 }
 0x2fa   : > { %v1025_v49 = vpop.f32.mrb[12].mxu1 }
 0x2fb   : > { %v2069_v50 = vadd.f32 %v1025_v49, %v834_v46  ;;  %v1027_v51 = vpop.f32.mrb[13].mxu1  ;;  %v1081_v49 = vmax.f32 (!%p1341_p6), %v2051_v16, 0.0 }
 0x2fc   : > { %v2071_v53 = vadd.f32 %v1027_v51, %v834_v46  ;;  %v1029_v54 = vpop.f32.mrb[14].mxu1  ;;  %v1080_v46 = vmax.f32 (!%p1341_p6), %v2049_v11, 0.0  ;;  %v1082_v51 = vmax.f32 (!%p1341_p6), %v2053_v18, 0.0 }
 0x2fd   : > { %v2073_v55 = vadd.f32 %v1029_v54, %v839_v52  ;;  %v1031_v56 = vpop.f32.mrb[15].mxu1  ;;  %v1084_v54 = vmax.f32 (!%p1341_p6), %v2057_v27, 0.0  ;;  %1113 = vst [vmem:[#allocation10 + $0x18] sm:$0xff] (!%p1341_p6), %v1081_v49 }
 0x2fe   : > { %v2075_v57 = vadd.f32 %v1031_v56, %v839_v52  ;;  %v1083_v52 = vmax.f32 (!%p1341_p6), %v2055_v23, 0.0  ;;  %v1085_v56 = vmax.f32 (!%p1341_p6), %v2059_v29, 0.0  ;;  %1112 = vst [vmem:[#allocation10 + $0x10] sm:$0xff] (!%p1341_p6), %v1080_v46  ;;  %1114 = vst [vmem:[#allocation10 + $0x20] sm:$0xff] (!%p1341_p6), %v1082_v51 }
 0x2ff   : > { %1116 = vst [vmem:[#allocation10 + $0x30] sm:$0xff] (!%p1341_p6), %v1084_v54 }
 0x300   : > { %1115 = vst [vmem:[#allocation10 + $0x28] sm:$0xff] (!%p1341_p6), %v1083_v52  ;;  %1117 = vst [vmem:[#allocation10 + $0x38] sm:$0xff] (!%p1341_p6), %v1085_v56 }
 0x302   : > { %v1035_v59 = vpop.f32.mrb[16].mxu1 }
 0x303   : > { %v2077_v60 = vadd.f32 %v1035_v59, %v844_v58  ;;  %v1037_v61 = vpop.f32.mrb[17].mxu1  ;;  %v1087_v59 = vmax.f32 (!%p1341_p6), %v2063_v39, 0.0 }
 0x304   : > { %v2079_v63 = vadd.f32 %v1037_v61, %v844_v58  ;;  %v1039_v0 = vpop.f32.mrb[18].mxu1  ;;  %v1086_v58 = vmax.f32 (!%p1341_p6), %v2061_v34, 0.0  ;;  %v1088_v61 = vmax.f32 (!%p1341_p6), %v2065_v41, 0.0 }
 0x305   : > { %v2081_v1 = vadd.f32 %v1039_v0, %v849_v62  ;;  %v1041_v2 = vpop.f32.mrb[19].mxu1  ;;  %v1090_v0 = vmax.f32 (!%p1341_p6), %v2069_v50, 0.0  ;;  %1119 = vst [vmem:[#allocation10 + $0x48] sm:$0xff] (!%p1341_p6), %v1087_v59 }
 0x306   : > { %v2083_v47 = vadd.f32 %v1041_v2, %v849_v62  ;;  %v1089_v62 = vmax.f32 (!%p1341_p6), %v2067_v45, 0.0  ;;  %v1091_v2 = vmax.f32 (!%p1341_p6), %v2071_v53, 0.0  ;;  %1118 = vst [vmem:[#allocation10 + $0x40] sm:$0xff] (!%p1341_p6), %v1086_v58  ;;  %1120 = vst [vmem:[#allocation10 + $0x50] sm:$0xff] (!%p1341_p6), %v1088_v61 }
 0x307   : > { %1122 = vst [vmem:[#allocation10 + $0x60] sm:$0xff] (!%p1341_p6), %v1090_v0 }
 0x308   : > { %1121 = vst [vmem:[#allocation10 + $0x58] sm:$0xff] (!%p1341_p6), %v1089_v62  ;;  %1123 = vst [vmem:[#allocation10 + $0x68] sm:$0xff] (!%p1341_p6), %v1091_v2 }
 0x30a   : > { %v1045_v8 = vpop.f32.mrb[20].mxu1 }
 0x30b   : > { %v2085_v13 = vadd.f32 %v1045_v8, %v854_v7  ;;  %v1047_v14 = vpop.f32.mrb[21].mxu1  ;;  %v1093_v8 = vmax.f32 (!%p1341_p6), %v2075_v57, 0.0 }
 0x30c   : > { %v2087_v20 = vadd.f32 %v1047_v14, %v854_v7  ;;  %v1049_v25 = vpop.f32.mrb[22].mxu1  ;;  %v1092_v7 = vmax.f32 (!%p1341_p6), %v2073_v55, 0.0  ;;  %v1094_v14 = vmax.f32 (!%p1341_p6), %v2077_v60, 0.0 }
 0x30d   : > { %v2089_v26 = vadd.f32 %v1049_v25, %v859_v19  ;;  %v1051_v31 = vpop.f32.mrb[23].mxu1  ;;  %v1096_v25 = vmax.f32 (!%p1341_p6), %v2081_v1, 0.0  ;;  %1125 = vst [vmem:[#allocation10 + $0x78] sm:$0xff] (!%p1341_p6), %v1093_v8 }
 0x30e   : > { %v2091_v32 = vadd.f32 %v1051_v31, %v859_v19  ;;  %v1095_v19 = vmax.f32 (!%p1341_p6), %v2079_v63, 0.0  ;;  %v1097_v31 = vmax.f32 (!%p1341_p6), %v2083_v47, 0.0  ;;  %1124 = vst [vmem:[#allocation10 + $0x70] sm:$0xff] (!%p1341_p6), %v1092_v7  ;;  %1126 = vst [vmem:[#allocation10 + $0x80] sm:$0xff] (!%p1341_p6), %v1094_v14 }
 0x30f   : > { %1128 = vst [vmem:[#allocation10 + $0x90] sm:$0xff] (!%p1341_p6), %v1096_v25 }
 0x310   : > { %1127 = vst [vmem:[#allocation10 + $0x88] sm:$0xff] (!%p1341_p6), %v1095_v19  ;;  %1129 = vst [vmem:[#allocation10 + $0x98] sm:$0xff] (!%p1341_p6), %v1097_v31 }
 0x312   : > { %v1055_v38 = vpop.f32.mrb[24].mxu1 }
 0x313   : > { %v2093_v43 = vadd.f32 %v1055_v38, %v864_v37  ;;  %v1057_v44 = vpop.f32.mrb[25].mxu1  ;;  %v1099_v38 = vmax.f32 (!%p1341_p6), %v2087_v20, 0.0 }
 0x314   : > { %v2095_v3 = vadd.f32 %v1057_v44, %v864_v37  ;;  %v1059_v4 = vpop.f32.mrb[26].mxu1  ;;  %v1098_v37 = vmax.f32 (!%p1341_p6), %v2085_v13, 0.0  ;;  %v1100_v44 = vmax.f32 (!%p1341_p6), %v2089_v26, 0.0 }
 0x315   : > { %v2097_v6 = vadd.f32 %v1059_v4, %v869_v48  ;;  %v1061_v10 = vpop.f32.mrb[27].mxu1  ;;  %v1102_v4 = vmax.f32 (!%p1341_p6), %v2093_v43, 0.0  ;;  %1131 = vst [vmem:[#allocation10 + $0xa8] sm:$0xff] (!%p1341_p6), %v1099_v38 }
 0x316   : > { %v2099_v12 = vadd.f32 %v1061_v10, %v869_v48  ;;  %v1101_v48 = vmax.f32 (!%p1341_p6), %v2091_v32, 0.0  ;;  %v1103_v10 = vmax.f32 (!%p1341_p6), %v2095_v3, 0.0  ;;  %1130 = vst [vmem:[#allocation10 + $0xa0] sm:$0xff] (!%p1341_p6), %v1098_v37  ;;  %1132 = vst [vmem:[#allocation10 + $0xb0] sm:$0xff] (!%p1341_p6), %v1100_v44 }
 0x317   : > { %1134 = vst [vmem:[#allocation10 + $0xc0] sm:$0xff] (!%p1341_p6), %v1102_v4 }
 0x318   : > { %1077 = sbr.rel (%p1341_p6) target bundleno = 803 (0x323), region = 60  ;;  %1133 = vst [vmem:[#allocation10 + $0xb8] sm:$0xff] (!%p1341_p6), %v1101_v48  ;;  %1135 = vst [vmem:[#allocation10 + $0xc8] sm:$0xff] (!%p1341_p6), %v1103_v10 }
 0x31a   : > { %v1065_v17 = vpop.f32.mrb[28].mxu1 }
 0x31b   : > { %v2101_v21 = vadd.f32 %v1065_v17, %v874_v15  ;;  %v1067_v22 = vpop.f32.mrb[29].mxu1  ;;  %v1105_v17 = vmax.f32 (!%p1341_p6), %v2099_v12, 0.0 }
 0x31c   : > { %v2103_v28 = vadd.f32 %v1067_v22, %v874_v15  ;;  %v1069_v30 = vpop.f32.mrb[30].mxu1  ;;  %v1104_v15 = vmax.f32 (!%p1341_p6), %v2097_v6, 0.0 }
 0x31d   : > { %v2105_v33 = vadd.f32 %v1069_v30, %v879_v24  ;;  %v1071_v35 = vpop.f32.mrb[31].mxu1  ;;  %v1106_v22 = vmax.f32 (!%p1341_p6), %v2101_v21, 0.0  ;;  %1137 = vst [vmem:[#allocation10 + $0xd8] sm:$0xff] (!%p1341_p6), %v1105_v17 }
 0x31e   : > { %v2107_v36 = vadd.f32 %v1071_v35, %v879_v24  ;;  %v1107_v24 = vmax.f32 (!%p1341_p6), %v2103_v28, 0.0  ;;  %1136 = vst [vmem:[#allocation10 + $0xd0] sm:$0xff] (!%p1341_p6), %v1104_v15 }
 0x31f   : > { %v1108_v30 = vmax.f32 %v2105_v33, 0.0  ;;  %1138 = vst [vmem:[#allocation10 + $0xe0] sm:$0xff] %v1106_v22 }
 0x320   : > { %v1109_v35 = vmax.f32 %v2107_v36, 0.0  ;;  %1139 = vst [vmem:[#allocation10 + $0xe8] sm:$0xff] %v1107_v24 }
 0x321   : > { %1140 = vst [vmem:[#allocation10 + $0xf0] sm:$0xff] %v1108_v30 }
 0x322   : > { %1141 = vst [vmem:[#allocation10 + $0xf8] sm:$0xff] %v1109_v35 }
 0x323 PF: > { %p1342_p0 = scmp.ne.s32.totalorder %s1748_s19, 2 }
 0x324   : > { %1146 = vst [vmem:[#allocation10] sm:$0xff] (!%p1342_p0), %v2045_v5  ;;  %1147 = vst [vmem:[#allocation10 + $0x8] sm:$0xff] (!%p1342_p0), %v2047_v9 }
 0x325   : > { %1145 = sbr.rel (%p1342_p0) target bundleno = 820 (0x334), region = 64  ;;  %1148 = vst [vmem:[#allocation10 + $0x10] sm:$0xff] (!%p1342_p0), %v2049_v11  ;;  %1149 = vst [vmem:[#allocation10 + $0x18] sm:$0xff] (!%p1342_p0), %v2051_v16 }
 0x326   : > { %1150 = vst [vmem:[#allocation10 + $0x20] sm:$0xff] (!%p1342_p0), %v2053_v18  ;;  %1151 = vst [vmem:[#allocation10 + $0x28] sm:$0xff] (!%p1342_p0), %v2055_v23 }
 0x327   : > { %1152 = vst [vmem:[#allocation10 + $0x30] sm:$0xff] (!%p1342_p0), %v2057_v27  ;;  %1153 = vst [vmem:[#allocation10 + $0x38] sm:$0xff] (!%p1342_p0), %v2059_v29 }
 0x328   : > { %1154 = vst [vmem:[#allocation10 + $0x40] sm:$0xff] (!%p1342_p0), %v2061_v34  ;;  %1155 = vst [vmem:[#allocation10 + $0x48] sm:$0xff] (!%p1342_p0), %v2063_v39 }
 0x329   : > { %1156 = vst [vmem:[#allocation10 + $0x50] sm:$0xff] (!%p1342_p0), %v2065_v41  ;;  %1157 = vst [vmem:[#allocation10 + $0x58] sm:$0xff] (!%p1342_p0), %v2067_v45 }
 0x32a   : > { %1158 = vst [vmem:[#allocation10 + $0x60] sm:$0xff] (!%p1342_p0), %v2069_v50  ;;  %1159 = vst [vmem:[#allocation10 + $0x68] sm:$0xff] (!%p1342_p0), %v2071_v53 }
 0x32b   : > { %1160 = vst [vmem:[#allocation10 + $0x70] sm:$0xff] (!%p1342_p0), %v2073_v55  ;;  %1161 = vst [vmem:[#allocation10 + $0x78] sm:$0xff] (!%p1342_p0), %v2075_v57 }
 0x32c   : > { %1162 = vst [vmem:[#allocation10 + $0x80] sm:$0xff] %v2077_v60  ;;  %1163 = vst [vmem:[#allocation10 + $0x88] sm:$0xff] %v2079_v63 }
 0x32d   : > { %1164 = vst [vmem:[#allocation10 + $0x90] sm:$0xff] %v2081_v1  ;;  %1165 = vst [vmem:[#allocation10 + $0x98] sm:$0xff] %v2083_v47 }
 0x32e   : > { %1166 = vst [vmem:[#allocation10 + $0xa0] sm:$0xff] %v2085_v13  ;;  %1167 = vst [vmem:[#allocation10 + $0xa8] sm:$0xff] %v2087_v20 }
 0x32f   : > { %1168 = vst [vmem:[#allocation10 + $0xb0] sm:$0xff] %v2089_v26  ;;  %1169 = vst [vmem:[#allocation10 + $0xb8] sm:$0xff] %v2091_v32 }
 0x330   : > { %1170 = vst [vmem:[#allocation10 + $0xc0] sm:$0xff] %v2093_v43  ;;  %1171 = vst [vmem:[#allocation10 + $0xc8] sm:$0xff] %v2095_v3 }
 0x331   : > { %1172 = vst [vmem:[#allocation10 + $0xd0] sm:$0xff] %v2097_v6  ;;  %1173 = vst [vmem:[#allocation10 + $0xd8] sm:$0xff] %v2099_v12 }
 0x332   : > { %1174 = vst [vmem:[#allocation10 + $0xe0] sm:$0xff] %v2101_v21  ;;  %1175 = vst [vmem:[#allocation10 + $0xe8] sm:$0xff] %v2103_v28 }
 0x333   : > { %1176 = vst [vmem:[#allocation10 + $0xf0] sm:$0xff] %v2105_v33  ;;  %1177 = vst [vmem:[#allocation10 + $0xf8] sm:$0xff] %v2107_v36 }
 0x334 PF: > { %p1384_p8 = scmp.eq.s32.totalorder %s1748_s19, 2  ;;  %s1701_s25 = smov [#allocation10]  }
 0x335   : > { %s1184_s21 = sshll.u32 %s1701_s25, 4  ;;  %s1185_s21 = int_to_ptr.vmem [resolvable:$true] %s1184_s21 }
 0x336   : > { %s1618_s24 = scalar_lea.vmem %s1185_s21, 4096  ;;  %p1625_p11 = scmp.lt.s32.totalorder %s1185_s21, %s1185_s21 }
 0x337   : > { %p1619_p2 = scmp.ne.s32.totalorder %s1185_s21, %s1618_s24  ;;  %p1626_p12 = scmp.lt.s32.totalorder %s1618_s24, %s1618_s24 }
 0x339   : > { %p1620_p4 = pnand %p1619_p2, %p1384_p8  ;;  %p1627_p13 = por %p1626_p12, %p1625_p11 }
 0x33b   : > { %p1621_p7 = pneg %p1620_p4 }
 0x33d   : > { %p1628_p5 = pnand %p1627_p13, %p1621_p7 }
 0x33f   : > { %1631 = shalt.err (!%p1628_p5)
}
 0x340   : > { %s1632_s22 = scalar_lea.hbm %s2215_s4, 4096 }
 0x341   : > { %p1633_p10 = scmp.ne.s32.totalorder %s2215_s4, %s1632_s22  ;;  %p1638_p3 = scmp.lt.u32.totalorder %s1632_s22, %s2215_s4 }
 0x343   : > { %p1634_p1 = pnand %p1633_p10, %p1384_p8 }
 0x345   : > { %p1635_p9 = pneg %p1634_p1 }
 0x347   : > { %p1640_p6 = pnand %p1638_p3, %p1635_p9 }
 0x349   : > { %1643 = shalt.err (!%p1640_p6)
}
 0x34a   : > { %s1702_s9 = smov 256   ;;  %s1703_s27 = smov 16  }
 0x34b   : > { %1362 = dma.vmem_to_hbm [thread:$0]  (%p1384_p8), %s1185_s21, 4096, %s2215_s4, [#allocation5], %s1702_s9, %s1702_s9, %s1703_s27  }
 0x34c   : > { %1673 = dma.done.wait (%p1384_p8), [#allocation5], 4096  }
 0x34d   : > { %1675 = vsyncadd (%p1384_p8), [#allocation5], 4294963200 }
 0x34e PF: > { %p14_p0 = scmp.ge.s32.totalorder %s1751_s20, 5   ;;  %s2241_s15 = smov %s1682_s16 }
 0x34f   : > { %s2242_s16 = smov %s1686_s17  ;;  %s2243_s17 = smov %s1761_s23 }
 0x350   : > { %s2244_s18 = smov %s1751_s20  ;;  %16 = sbr.rel (!%p14_p0) target bundleno = 4 (0x4), region = 103 }
 0x357   :  { %1200 = vsyncpa [#allocation4], 1 }
 0x358   :  { %1202 = vsyncpa [#allocation4 + $0x1], 1 }
 0x359   :  { %1203 = vsyncpa [#allocation7], 1 }
 0x35a   :  { %1204 = vsyncpa [#allocation5], 1 }
 0x35b   :  { %1206 = vsyncpa [#allocation5 + $0x1], 1 }

</bundles_post_ra>
